<compile_context>
chip_gen: v7x
topology: tpu7x:2x2x1
jax: 0.10.0
libtpu: 0.0.40
codegen_flags: <defaults>
</compile_context>

<pallas_src>
import functools

import jax
import jax.numpy as jnp
from jax import lax
from jax.experimental import pallas as pl
from jax.experimental.pallas import tpu as pltpu


def _soft_iou_kernel(x_ref, t_ref, o_ref,
                     inter_acc, sump_acc, cnt_acc,
                     *, n_classes, hw_valid, tile_hw, needs_mask):
    # x_ref: (1, C, TILE_HW) f32 logits tile for one batch element
    # t_ref: (1, 1, TILE_HW) i32 target class ids
    # o_ref: (1, 1, 1) f32 per-batch sum_c inter_c / (union_c + eps)
    # *_acc: (C, TILE_HW) f32 elementwise accumulators across HW tiles
    h = pl.program_id(1)
    num_h = pl.num_programs(1)

    @pl.when(h == 0)
    def _():
        inter_acc[...] = jnp.zeros_like(inter_acc)
        sump_acc[...] = jnp.zeros_like(sump_acc)
        cnt_acc[...] = jnp.zeros_like(cnt_acc)

    x = x_ref[0]                                    # (C, TILE_HW) f32
    t = t_ref[0]                                    # (1, TILE_HW) i32
    C = n_classes

    # softmax over the class axis: one reciprocal per pixel, broadcast multiply.
    m = jnp.max(x, axis=0, keepdims=True)           # (1, TILE_HW)
    e = jnp.exp(x - m)                              # (C, TILE_HW)
    inv = 1.0 / jnp.sum(e, axis=0, keepdims=True)   # exact recip (1e-5 match needed)
    p = e * inv                                     # (C, TILE_HW)

    class_ids = lax.broadcasted_iota(jnp.int32, (C, tile_hw), 0)
    hit = class_ids == t                            # (C, TILE_HW) bool

    if needs_mask:
        lane_idx = lax.broadcasted_iota(jnp.int32, (1, tile_hw), 1)
        valid = (lane_idx + h * tile_hw) < hw_valid  # (1, TILE_HW) bool
        p = jnp.where(valid, p, jnp.float32(0.0))
        hit = jnp.logical_and(hit, valid)

    onehot = hit.astype(jnp.float32)
    pt = p * onehot

    # Pure VPU elementwise accumulation; cross-lane reduce deferred to last step.
    inter_acc[...] += pt
    sump_acc[...] += p
    cnt_acc[...] += onehot

    @pl.when(h == num_h - 1)
    def _():
        inter_c = jnp.sum(inter_acc[...], axis=1, keepdims=True)  # (C, 1)
        sump_c = jnp.sum(sump_acc[...], axis=1, keepdims=True)    # (C, 1)
        cnt_c = jnp.sum(cnt_acc[...], axis=1, keepdims=True)      # (C, 1)
        union_c = sump_c + cnt_c - inter_c
        ratio = inter_c / (union_c + jnp.float32(1e-16))
        o_ref[...] = jnp.sum(ratio).reshape(1, 1, 1)


def soft_iou_loss(logits, target, n_classes):
    """logits: (N, C, H, W) float; target: (N, H, W) int class ids."""
    N, C, H, W = logits.shape
    assert C == n_classes
    HW = H * W

    # Tile the spatial axis: keep each logits input buffer at ~2 MB so it
    # double-buffers comfortably within scoped VMEM on v5e/v6e/v7x.
    hw_pad128 = ((HW + 127) // 128) * 128
    budget_bytes = 2 * 1024 * 1024
    tile_from_budget = max(256, (budget_bytes // (4 * C)) // 128 * 128)
    tile_hw = min(hw_pad128, tile_from_budget)
    num_hw_tiles = pl.cdiv(HW, tile_hw)
    hw_pad = num_hw_tiles * tile_hw
    needs_mask = hw_pad != HW

    x = logits.reshape(N, C, HW).astype(jnp.float32)
    t = target.reshape(N, 1, HW).astype(jnp.int32)
    if needs_mask:
        x = jnp.pad(x, ((0, 0), (0, 0), (0, hw_pad - HW)))
        t = jnp.pad(t, ((0, 0), (0, 0), (0, hw_pad - HW)))

    kernel = functools.partial(
        _soft_iou_kernel,
        n_classes=C, hw_valid=HW, tile_hw=tile_hw, needs_mask=needs_mask)

    per_batch = pl.pallas_call(
        kernel,
        out_shape=jax.ShapeDtypeStruct((N, 1, 1), jnp.float32),
        grid_spec=pltpu.PrefetchScalarGridSpec(
            num_scalar_prefetch=0,
            grid=(N, num_hw_tiles),
            in_specs=[
                pl.BlockSpec((1, C, tile_hw), lambda n, h: (n, 0, h)),
                pl.BlockSpec((1, 1, tile_hw), lambda n, h: (n, 0, h)),
            ],
            out_specs=pl.BlockSpec((1, 1, 1), lambda n, h: (n, 0, 0)),
            scratch_shapes=[
                pltpu.VMEM((C, tile_hw), jnp.float32),  # inter
                pltpu.VMEM((C, tile_hw), jnp.float32),  # sum_p
                pltpu.VMEM((C, tile_hw), jnp.float32),  # per-class pixel count
            ],
        ),
        compiler_params=pltpu.CompilerParams(
            dimension_semantics=("parallel", "arbitrary"),
            vmem_limit_bytes=32 * 1024 * 1024,
        ),
    )(x, t)

    # Final -mean over (N, C) as a trivial JAX epilogue (static denominator).
    denom = jnp.float32(N * n_classes)
    return -jnp.sum(per_batch) / denom


def _reference(logits, target, n_classes):
    # pure-JAX reference mirroring the PyTorch forward
    p = jax.nn.softmax(logits, axis=1)
    onehot = jax.nn.one_hot(target, n_classes, axis=1, dtype=jnp.float32)
    N = logits.shape[0]
    inter = (p * onehot).reshape(N, n_classes, -1).sum(2)
    union = (p + onehot - p * onehot).reshape(N, n_classes, -1).sum(2)
    return -(inter / (union + 1e-16)).mean()


if __name__ == "__main__":
    n_classes = 4
    N, H, W = 2, 16, 16

    key = jax.random.PRNGKey(0)
    k1, k2 = jax.random.split(key)
    logits = jax.random.normal(k1, (N, n_classes, H, W), dtype=jnp.float32)
    target = jax.random.randint(k2, (N, H, W), 0, n_classes, dtype=jnp.int32)

    loss = soft_iou_loss(logits, target, n_classes)
    jax.block_until_ready(loss)

    ref = _reference(logits, target, n_classes)
    assert jnp.allclose(loss, ref, atol=1e-5, rtol=1e-5), (loss, ref)
    print("KERNEL_OK")
</pallas_src>

<mosaic_0001>
module attributes {stable_mosaic.version = 11 : i64} {
  func.func @_soft_iou_kernel(%arg0: i32, %arg1: i32, %arg2: memref<1x4x256xf32, #tpu.memory_space<vmem>>, %arg3: memref<1x1x256xi32, #tpu.memory_space<vmem>>, %arg4: memref<1x1x1xf32, #tpu.memory_space<vmem>>, %arg5: memref<4x256xf32, #tpu.memory_space<vmem>>, %arg6: memref<4x256xf32, #tpu.memory_space<vmem>>, %arg7: memref<4x256xf32, #tpu.memory_space<vmem>>) attributes {dimension_semantics = [#tpu.dimension_semantics<parallel>, #tpu.dimension_semantics<arbitrary>], iteration_bounds = array<i64: 2, 1>, scalar_prefetch = 0 : i64, scratch_operands = 3 : i64, tpu.core_type = #tpu.core_type<tc>, window_params = [{transform_indices = @transform_0, window_bounds = array<i64: 1, 4, 256>}, {transform_indices = @transform_1, window_bounds = array<i64: 1, 1, 256>}, {transform_indices = @transform_2, window_bounds = array<i64: 1, 1, 1>}]} {
    %c0_i32 = arith.constant 0 : i32
    %0 = arith.cmpi eq, %arg1, %c0_i32 : i32
    %1 = arith.extui %0 : i1 to i32
    %c0_i32_0 = arith.constant 0 : i32
    %2 = arith.cmpi ne, %1, %c0_i32_0 : i32
    scf.if %2 {
      %cst_22 = arith.constant 0.000000e+00 : f32
      %36 = vector.broadcast %cst_22 : f32 to vector<4x256xf32>
      %c0_23 = arith.constant 0 : index
      %c0_24 = arith.constant 0 : index
      %37 = vector.load %arg5[%c0_23, %c0_24] : memref<4x256xf32, #tpu.memory_space<vmem>>, vector<4x256xf32>
      tpu.vector_store %arg5[%c0_23, %c0_24], %36 {strides = array<i32>} : memref<4x256xf32, #tpu.memory_space<vmem>>, vector<4x256xf32>,
      %cst_25 = arith.constant 0.000000e+00 : f32
      %38 = vector.broadcast %cst_25 : f32 to vector<4x256xf32>
      %c0_26 = arith.constant 0 : index
      %c0_27 = arith.constant 0 : index
      %39 = vector.load %arg6[%c0_26, %c0_27] : memref<4x256xf32, #tpu.memory_space<vmem>>, vector<4x256xf32>
      tpu.vector_store %arg6[%c0_26, %c0_27], %38 {strides = array<i32>} : memref<4x256xf32, #tpu.memory_space<vmem>>, vector<4x256xf32>,
      %cst_28 = arith.constant 0.000000e+00 : f32
      %40 = vector.broadcast %cst_28 : f32 to vector<4x256xf32>
      %c0_29 = arith.constant 0 : index
      %c0_30 = arith.constant 0 : index
      %41 = vector.load %arg7[%c0_29, %c0_30] : memref<4x256xf32, #tpu.memory_space<vmem>>, vector<4x256xf32>
      tpu.vector_store %arg7[%c0_29, %c0_30], %40 {strides = array<i32>} : memref<4x256xf32, #tpu.memory_space<vmem>>, vector<4x256xf32>,
    } else {
    }
    %c0 = arith.constant 0 : index
    %c0_1 = arith.constant 0 : index
    %c0_2 = arith.constant 0 : index
    %3 = vector.load %arg2[%c0, %c0_1, %c0_2] : memref<1x4x256xf32, #tpu.memory_space<vmem>>, vector<1x4x256xf32>
    %4 = vector.shape_cast %3 : vector<1x4x256xf32> to vector<4x256xf32>
    %c0_3 = arith.constant 0 : index
    %c0_4 = arith.constant 0 : index
    %c0_5 = arith.constant 0 : index
    %5 = vector.load %arg3[%c0_3, %c0_4, %c0_5] : memref<1x1x256xi32, #tpu.memory_space<vmem>>, vector<1x1x256xi32>
    %6 = vector.shape_cast %5 : vector<1x1x256xi32> to vector<1x256xi32>
    %cst = arith.constant dense<0xFF800000> : vector<256xf32>
    %7 = vector.multi_reduction <maximumf>, %4, %cst [0] : vector<4x256xf32> to vector<256xf32>
    %8 = vector.shape_cast %7 : vector<256xf32> to vector<1x256xf32>
    %9 = vector.broadcast %8 : vector<1x256xf32> to vector<4x256xf32>
    %10 = arith.subf %4, %9 : vector<4x256xf32>
    %11 = math.exp %10 : vector<4x256xf32>
    %cst_6 = arith.constant dense<0.000000e+00> : vector<256xf32>
    %12 = vector.multi_reduction <add>, %11, %cst_6 [0] : vector<4x256xf32> to vector<256xf32>
    %13 = vector.shape_cast %12 : vector<256xf32> to vector<1x256xf32>
    %cst_7 = arith.constant 1.000000e+00 : f32
    %14 = vector.broadcast %cst_7 : f32 to vector<1x256xf32>
    %15 = arith.divf %14, %13 : vector<1x256xf32>
    %16 = vector.broadcast %15 : vector<1x256xf32> to vector<4x256xf32>
    %17 = arith.mulf %11, %16 : vector<4x256xf32>
    %18 = tpu.iota {dimensions = array<i32: 0>} : vector<4x256xi32>
    %19 = vector.broadcast %6 : vector<1x256xi32> to vector<4x256xi32>
    %20 = arith.cmpi eq, %18, %19 : vector<4x256xi32>
    %21 = arith.extui %20 : vector<4x256xi1> to vector<4x256xi32>
    %22 = arith.sitofp %21 : vector<4x256xi32> to vector<4x256xf32>
    %23 = arith.mulf %17, %22 : vector<4x256xf32>
    %c0_8 = arith.constant 0 : index
    %c0_9 = arith.constant 0 : index
    %24 = vector.load %arg5[%c0_8, %c0_9] : memref<4x256xf32, #tpu.memory_space<vmem>>, vector<4x256xf32>
    %25 = arith.addf %24, %23 : vector<4x256xf32>
    %c0_10 = arith.constant 0 : index
    %c0_11 = arith.constant 0 : index
    %26 = vector.load %arg5[%c0_10, %c0_11] : memref<4x256xf32, #tpu.memory_space<vmem>>, vector<4x256xf32>
    tpu.vector_store %arg5[%c0_10, %c0_11], %25 {strides = array<i32>} : memref<4x256xf32, #tpu.memory_space<vmem>>, vector<4x256xf32>,
    %c0_12 = arith.constant 0 : index
    %c0_13 = arith.constant 0 : index
    %27 = vector.load %arg6[%c0_12, %c0_13] : memref<4x256xf32, #tpu.memory_space<vmem>>, vector<4x256xf32>
    %28 = arith.addf %27, %17 : vector<4x256xf32>
    %c0_14 = arith.constant 0 : index
    %c0_15 = arith.constant 0 : index
    %29 = vector.load %arg6[%c0_14, %c0_15] : memref<4x256xf32, #tpu.memory_space<vmem>>, vector<4x256xf32>
    tpu.vector_store %arg6[%c0_14, %c0_15], %28 {strides = array<i32>} : memref<4x256xf32, #tpu.memory_space<vmem>>, vector<4x256xf32>,
    %c0_16 = arith.constant 0 : index
    %c0_17 = arith.constant 0 : index
    %30 = vector.load %arg7[%c0_16, %c0_17] : memref<4x256xf32, #tpu.memory_space<vmem>>, vector<4x256xf32>
    %31 = arith.addf %30, %22 : vector<4x256xf32>
    %c0_18 = arith.constant 0 : index
    %c0_19 = arith.constant 0 : index
    %32 = vector.load %arg7[%c0_18, %c0_19] : memref<4x256xf32, #tpu.memory_space<vmem>>, vector<4x256xf32>
    tpu.vector_store %arg7[%c0_18, %c0_19], %31 {strides = array<i32>} : memref<4x256xf32, #tpu.memory_space<vmem>>, vector<4x256xf32>,
    %c0_i32_20 = arith.constant 0 : i32
    %33 = arith.cmpi eq, %arg1, %c0_i32_20 : i32
    %34 = arith.extui %33 : i1 to i32
    %c0_i32_21 = arith.constant 0 : i32
    %35 = arith.cmpi ne, %34, %c0_i32_21 : i32
    scf.if %35 {
      %c0_22 = arith.constant 0 : index
      %c0_23 = arith.constant 0 : index
      %36 = vector.load %arg5[%c0_22, %c0_23] : memref<4x256xf32, #tpu.memory_space<vmem>>, vector<4x256xf32>
      %cst_24 = arith.constant dense<0.000000e+00> : vector<4xf32>
      %37 = vector.multi_reduction <add>, %36, %cst_24 [1] : vector<4x256xf32> to vector<4xf32>
      %38 = vector.shape_cast %37 : vector<4xf32> to vector<4x1xf32>
      %c0_25 = arith.constant 0 : index
      %c0_26 = arith.constant 0 : index
      %39 = vector.load %arg6[%c0_25, %c0_26] : memref<4x256xf32, #tpu.memory_space<vmem>>, vector<4x256xf32>
      %cst_27 = arith.constant dense<0.000000e+00> : vector<4xf32>
      %40 = vector.multi_reduction <add>, %39, %cst_27 [1] : vector<4x256xf32> to vector<4xf32>
      %41 = vector.shape_cast %40 : vector<4xf32> to vector<4x1xf32>
      %c0_28 = arith.constant 0 : index
      %c0_29 = arith.constant 0 : index
      %42 = vector.load %arg7[%c0_28, %c0_29] : memref<4x256xf32, #tpu.memory_space<vmem>>, vector<4x256xf32>
      %cst_30 = arith.constant dense<0.000000e+00> : vector<4xf32>
      %43 = vector.multi_reduction <add>, %42, %cst_30 [1] : vector<4x256xf32> to vector<4xf32>
      %44 = vector.shape_cast %43 : vector<4xf32> to vector<4x1xf32>
      %45 = arith.addf %41, %44 : vector<4x1xf32>
      %46 = arith.subf %45, %38 : vector<4x1xf32>
      %cst_31 = arith.constant 1.000000e-16 : f32
      %47 = vector.broadcast %cst_31 : f32 to vector<4x1xf32>
      %48 = arith.addf %46, %47 : vector<4x1xf32>
      %49 = arith.divf %38, %48 : vector<4x1xf32>
      %50 = vector.shape_cast %49 : vector<4x1xf32> to vector<1x4x1xf32>
      %cst_32 = arith.constant dense<0.000000e+00> : vector<1xf32>
      %51 = vector.multi_reduction <add>, %50, %cst_32 [1, 2] : vector<1x4x1xf32> to vector<1xf32>
      %52 = vector.shape_cast %51 : vector<1xf32> to vector<1x1x1xf32>
      %53 = vector.extract %52[0, 0, 0] : f32 from vector<1x1x1xf32>
      %54 = vector.broadcast %53 : f32 to vector<1x1x1xf32>
      %c0_33 = arith.constant 0 : index
      %c0_34 = arith.constant 0 : index
      %c0_35 = arith.constant 0 : index
      %55 = vector.load %arg4[%c0_33, %c0_34, %c0_35] : memref<1x1x1xf32, #tpu.memory_space<vmem>>, vector<1x1x1xf32>
      tpu.vector_store %arg4[%c0_33, %c0_34, %c0_35], %54 {strides = array<i32>} : memref<1x1x1xf32, #tpu.memory_space<vmem>>, vector<1x1x1xf32>,
    } else {
    }
    return
  }
  func.func @transform_0(%arg0: i32, %arg1: i32) -> (i32, i32, i32) {
    %c0_i32 = arith.constant 0 : i32
    %c0_i32_0 = arith.constant 0 : i32
    return %arg0, %c0_i32, %arg1 : i32, i32, i32
  }
  func.func @transform_1(%arg0: i32, %arg1: i32) -> (i32, i32, i32) {
    %c0_i32 = arith.constant 0 : i32
    %c0_i32_0 = arith.constant 0 : i32
    return %arg0, %c0_i32, %arg1 : i32, i32, i32
  }
  func.func @transform_2(%arg0: i32, %arg1: i32) -> (i32, i32, i32) {
    %c0_i32 = arith.constant 0 : i32
    %c0_i32_0 = arith.constant 0 : i32
    %c0_i32_1 = arith.constant 0 : i32
    return %arg0, %c0_i32, %c0_i32_0 : i32, i32, i32
  }
}

</mosaic_0001>

<bundles_post_ra>
// kernel: tpu_custom_call.1
= control target key start
LH: loop header
LB: loop body
LE: loop exit
PB: predicated region body
PF: predicated region fallthrough
CT: control target
= control target key end

     0   :  { %7 = vsyncpa [#allocation6], 0  ;;  %s858_s0 = inlined_call_operand.hbm [shape: f32[2,4,256], index: 0, kind: input, shape index: {}]   ;;  %s859_s1 = inlined_call_operand.hbm [shape: s32[2,1,256], index: 1, kind: input, shape index: {}]   ;;  %s860_s2 = inlined_call_operand.vmem [shape: f32[2,1,1], index: 2, kind: output, shape index: {}]  }
   0x1   :  { %9 = vsyncpa [#allocation6 + $0x1], 0 }
   0x2   :  { %10 = vsyncpa [#allocation8], 0 }
   0x3   :  { %12 = vsyncpa [#allocation8 + $0x1], 0  ;;  %s679_s9 = smov 0   ;;  %s681_s10 = smov 0  }
   0x4   :  { %s683_s11 = smov 0   ;;  %s685_s12 = smov 0  }
   0x5   :  { %s687_s13 = smov 0   ;;  %s689_s14 = smov 0  }
   0x6 LB: > { %s453_s15 = sadd.s32 4294967295, %s659_s14   ;;  %s30_s16 = sadd.s32 1, %s655_s13  ;;  %s659_s14 = sphi %s689_s14, %s18_s14   ;;  %s655_s13 = sphi %s687_s13, %s874_s13   ;;  %s651_s12 = sphi %s685_s12, %s873_s12   ;;  %s647_s11 = sphi %s683_s11, %s872_s11   ;;  %s643_s10 = sphi %s681_s10, %s871_s10   ;;  %s639_s9 = sphi %s679_s9, %s870_s9  }
   0x7   : > { %p32_p0 = scmp.ge.s32.totalorder %s30_s16, 2  ;;  %s39_s17 = sadd.s32 1, %s647_s11 }
   0x8   : > { %p46_p1 = scmp.ne.s32.totalorder %s647_s11, %s643_s10  ;;  %p47_p2 = scmp.eq.s32.totalorder %s659_s14, 0 }
   0x9   : > { %s876_s16 = smov (%p32_p0, %s30_s16), 0  ;;  %p52_p4 = scmp.ne.s32.totalorder %s643_s10, %s639_s9 }
   0xa   : > { %p715_p3 = por %p47_p2, %p46_p1  ;;  %s34_s19 = ssub.s32 %s655_s13, %s876_s16 }
   0xb   : > { %p53_p5 = scmp.eq.s32.totalorder %s453_s15, 0  ;;  %p37_p6 = scmp.eq.s32.totalorder %s34_s19, 0 }
   0xc   : > { %p486_p8 = scmp.lt.s32.totalorder %s659_s14, 2  ;;  %s731_s22 = sand.u32 1, %s647_s11  }
   0xd   : > { %p722_p7 = por %p53_p5, %p52_p4  ;;  %s470_s23 = sshll.u32 %s655_s13, 7 }
   0xe   : > { %s728_s21 = scalar_select %p37_p6, %s647_s11, %s39_s17  }
   0xf   : > { %s863_s20 = scalar_select %p722_p7, 1, 0 }
  0x10   : > { %s457_s24 = sshll.u32 %s731_s22, 3  ;;  %s738_s27 = scalar_lea.hbm %s858_s0, %s470_s23 }
  0x11   : > { %s134_s28 = scalar_lea.vmem [#allocation5], %s457_s24  ;;  %p742_p9 = pnand %p486_p8, %p715_p3 }
  0x12   : > { %s144_s29 = sshll.u32 %s134_s28, 4  ;;  %s131_s3 = scalar_lea.sflag [#allocation6], %s731_s22  ;;  %s746_s29 = int_to_ptr.vmem [resolvable:$true] %s144_s29 }
  0x13   : > { %s545_s4 = scalar_lea.hbm %s738_s27, 128  ;;  %p547_p13 = pneg %p742_p9 }
  0x14   : > { %p546_p12 = scmp.ne.s32.totalorder %s738_s27, %s545_s4  ;;  %s550_s7 = scalar_lea.hbm %s858_s0, 256 }
  0x15   : > { %p551_p2 = scmp.lt.u32.totalorder %s738_s27, %s858_s0  ;;  %p552_p3 = scmp.lt.u32.totalorder %s550_s7, %s545_s4 }
  0x16   : > { %p548_p0 = pnand %p547_p13, %p546_p12  ;;  %p554_p5 = scmp.lt.u32.totalorder %s545_s4, %s738_s27 }
  0x17   : > { %p553_p4 = por %p552_p3, %p551_p2 }
  0x18   : > { %p549_p1 = pneg %p548_p0 }
  0x19   : > { %p555_p6 = por %p554_p5, %p553_p4 }
  0x1b   : > { %p556_p8 = pnand %p555_p6, %p549_p1 }
  0x1d   : > { %559 = shalt.err (!%p556_p8)
}
  0x1e   : > { %s560_s15 = scalar_lea.vmem %s746_s29, 128  ;;  %s661_s17 = smov [#allocation5]  }
  0x1f   : > { %p561_p12 = scmp.ne.s32.totalorder %s746_s29, %s560_s15  ;;  %s565_s18 = sshll.u32 %s661_s17, 4  ;;  %s566_s18 = int_to_ptr.vmem [resolvable:$false] %s565_s18 }
  0x20   : > { %s567_s19 = scalar_lea.vmem %s566_s18, 256  ;;  %p568_p11 = scmp.lt.s32.totalorder %s746_s29, %s566_s18 }
  0x21   : > { %p563_p0 = pnand %p561_p12, %p547_p13  ;;  %p569_p2 = scmp.lt.s32.totalorder %s567_s19, %s560_s15 }
  0x23   : > { %p564_p10 = pneg %p563_p0  ;;  %p570_p3 = por %p569_p2, %p568_p11 }
  0x25   : > { %p571_p4 = pnand %p570_p3, %p564_p10 }
  0x27   : > { %574 = shalt.err (!%p571_p4)
}
  0x28   : > { %482 = dma.hbm_to_vmem [thread:$0]  (!%p742_p9), %s738_s27, 128, %s746_s29, %s131_s3  }
  0x29   : > { %p865_p1 = scmp.lt.s32.totalorder %s659_s14, 3  ;;  %p866_p5 = scmp.ge.s32.totalorder %s659_s14, 1 }
  0x2a   : > { %s460_s24 = sshll.u32 %s731_s22, 1  ;;  %s471_s25 = sshll.u32 %s655_s13, 5 }
  0x2b   : > { %p780_p6 = pnand %p866_p5, %p865_p1  ;;  %s789_s4 = scalar_lea.hbm %s859_s1, %s471_s25 }
  0x2c   : > { %s155_s5 = scalar_lea.vmem [#allocation7], %s460_s24  ;;  %s152_s27 = scalar_lea.sflag [#allocation8], %s731_s22 }
  0x2d   : > { %s867_s23 = scalar_select %p780_p6, 1, 0 }
  0x2e   : > { %s165_s6 = sshll.u32 %s155_s5, 4  ;;  %s575_s29 = scalar_lea.hbm %s789_s4, 32  ;;  %s166_s6 = int_to_ptr.vmem [resolvable:$true] %s165_s6 }
  0x2f   : > { %p576_p10 = scmp.ne.s32.totalorder %s789_s4, %s575_s29  ;;  %s580_s8 = scalar_lea.hbm %s859_s1, 64 }
  0x30   : > { %p581_p12 = scmp.lt.u32.totalorder %s789_s4, %s859_s1  ;;  %p582_p0 = scmp.lt.u32.totalorder %s580_s8, %s575_s29 }
  0x31   : > { %p578_p11 = pnand %p576_p10, %p547_p13  ;;  %p584_p3 = scmp.lt.u32.totalorder %s575_s29, %s789_s4 }
  0x32   : > { %p583_p2 = por %p582_p0, %p581_p12 }
  0x33   : > { %p579_p8 = pneg %p578_p11 }
  0x34   : > { %p585_p4 = por %p584_p3, %p583_p2 }
  0x36   : > { %p586_p1 = pnand %p585_p4, %p579_p8 }
  0x38   : > { %589 = shalt.err (!%p586_p1)
}
  0x39   : > { %s590_s22 = scalar_lea.vmem %s166_s6, 32  ;;  %s662_s17 = smov [#allocation7]  }
  0x3a   : > { %p591_p5 = scmp.ne.s32.totalorder %s166_s6, %s590_s22  ;;  %s595_s18 = sshll.u32 %s662_s17, 4  ;;  %s596_s18 = int_to_ptr.vmem [resolvable:$false] %s595_s18 }
  0x3b   : > { %s597_s19 = scalar_lea.vmem %s596_s18, 64  ;;  %p598_p7 = scmp.lt.s32.totalorder %s166_s6, %s596_s18 }
  0x3c   : > { %p593_p10 = pnand %p591_p5, %p547_p13  ;;  %p599_p6 = scmp.lt.s32.totalorder %s597_s19, %s590_s22 }
  0x3e   : > { %p594_p11 = pneg %p593_p10  ;;  %p600_p0 = por %p599_p6, %p598_p7 }
  0x40   : > { %p601_p12 = pnand %p600_p0, %p594_p11 }
  0x42   : > { %604 = shalt.err (!%p601_p12)
}
  0x43   : > { %485 = dma.hbm_to_vmem [thread:$0]  (!%p742_p9), %s789_s4, 32, %s166_s6, %s152_s27  }
  0x44   : > { %p868_p8 = scmp.ne.s32.totalorder %s867_s23, 0 }
  0x45   : > { %s176_s24 = sand.u32 (!%p868_p8), 1, %s643_s10   ;;  %p869_p13 = scmp.ne.s32.totalorder (!%p868_p8), %s863_s20, 0 }
  0x46   : > { %174 = sbr.rel (%p868_p8) target bundleno = 521 (0x209), region = 28  ;;  %s464_s25 = sshll.u32 (!%p868_p8), %s176_s24, 3 }
  0x47   : > { %s177_s26 = scalar_lea.sflag (!%p868_p8), [#allocation6], %s176_s24  ;;  %s180_s28 = scalar_lea.vmem (!%p868_p8), [#allocation5], %s464_s25 }
  0x4d   : > { %630 = dma.done.wait (%p869_p13), %s177_s26, 128  }
  0x4e   : > { %632 = vsyncadd (%p869_p13), %s177_s26, 4294967168  ;;  %s465_s5 = sshll.u32 %s176_s24, 1  ;;  %s186_s29 = scalar_lea.sflag [#allocation8], %s176_s24 }
  0x4f   : > { %s818_s30 = scalar_lea.vmem [#allocation7], %s465_s5 }
  0x50   : > { %634 = dma.done.wait (%p869_p13), %s186_s29, 32  }
  0x51   : > { %636 = vsyncadd (%p869_p13), %s186_s29, 4294967264  ;;  %vm230_vm0 = vcmask 1043456   ;;  %v225_v0 = vld [vmem:[%s180_s28] sm:$0xff]  ;;  %v278_v26 = vlaneseq  ;;  %v226_v39 = vld [vmem:[%s818_s30] sm:$0x3]  ;;  %v663_v43 = vmov 0.0  }
  0x52   : > { %v228_v1 = vcombine.high %v225_v0, %v225_v0  ;;  %v231_v2 = vsel %vm230_vm0, %v225_v0, -inf  ;;  %vm343_vm3 = vcmask 3072   ;;  %p215_p7 = scmp.lt.s32.totalorder %s651_s12, 1  ;;  %vm355_vm4 = vcmask 0  }
  0x53   : > { %v232_v3 = vrot.slane %v231_v2, 4  ;;  %v279_v31 = vshrl.u32 %v278_v26, 7 }
  0x54   : > { %v238_v4 = vsel %vm230_vm0, %v228_v1, -inf  ;;  %s878_s12 = smov (!%p215_p7, %s651_s12), 1 }
  0x55   : > { %v233_v5 = vmax.f32 %v231_v2, %v232_v3  ;;  %v239_v6 = vrot.slane %v238_v4, 4  ;;  %v282_v36 = vsub.s32 0, %v279_v31  ;;  %v286_v37 = vsub.s32 1, %v279_v31  ;;  %s217_s4 = scalar_lea.vmem %s860_s2, %s878_s12 }
  0x57   : > { %v234_v7 = vrot.slane %v233_v5, 2  ;;  %v240_v8 = vmax.f32 %v238_v4, %v239_v6  ;;  %v283_v40 = vrot.slane %v226_v39, %v282_v36  ;;  %v287_v41 = vrot.slane %v226_v39, %v286_v37 }
  0x59   : > { %v235_v9 = vmax.f32 %v233_v5, %v234_v7  ;;  %v241_v10 = vrot.slane %v240_v8, 2  ;;  %vm288_vm1 = vcmp.eq.s32.totalorder %v279_v31, %v283_v40  ;;  %vm289_vm2 = vcmp.eq.s32.totalorder %v279_v31, %v287_v41 }
  0x5a   : > { %v466_v44 = vsel %vm288_vm1, 1.0, %v663_v43  ;;  %v467_v45 = vsel %vm289_vm2, 1.0, %v663_v43 }
  0x5b   : > { %v236_v11 = vrot.slane %v235_v9, 1  ;;  %v242_v12 = vmax.f32 %v240_v8, %v241_v10  ;;  %v296_v48 = vcombine.low %v466_v44, %v467_v45  ;;  %v472_v50 = vcombine.low %v467_v45, %v467_v45 }
  0x5d   : > { %v237_v13 = vmax.f32 %v235_v9, %v236_v11  ;;  %v243_v14 = vrot.slane %v242_v12, 1  ;;  %v333_v54 = vsel %vm230_vm0, %v296_v48, 0.0  ;;  %v334_v56 = vsel %vm230_vm0, %v472_v50, 0.0 }
  0x5e   : > { %v335_v61 = vadd.f32 %v334_v56, %v333_v54 }
  0x5f   : > { %v244_v15 = vmax.f32 %v242_v12, %v243_v14 }
  0x61   : > { %v247_v16 = vcombine.low %v237_v13, %v244_v15 }
  0x63   : > { %v249_v17 = vsub.f32 %v225_v0, %v247_v16 }
  0x65   : > { %v250_v18 = vmul.f32 1.442695, %v249_v17 }
  0x67   : > { %537 = vpow2.f32 %v250_v18 }
  0x71   : > { %v538_v19 = vpop.eup %537 }
  0x72   : > { %v253_v20 = vcombine.high %v538_v19, %v538_v19  ;;  %v255_v21 = vsel %vm230_vm0, %v538_v19, 0.0 }
  0x73   : > { %v256_v22 = vrot.slane %v255_v21, 4 }
  0x74   : > { %v262_v23 = vsel %vm230_vm0, %v253_v20, 0.0 }
  0x75   : > { %v257_v24 = vadd.f32 %v256_v22, %v255_v21  ;;  %v263_v25 = vrot.slane %v262_v23, 4 }
  0x77   : > { %v258_v27 = vrot.slane %v257_v24, 2  ;;  %v264_v28 = vadd.f32 %v263_v25, %v262_v23 }
  0x79   : > { %v259_v29 = vadd.f32 %v258_v27, %v257_v24  ;;  %v265_v30 = vrot.slane %v264_v28, 2 }
  0x7b   : > { %v260_v32 = vrot.slane %v259_v29, 1  ;;  %v266_v33 = vadd.f32 %v265_v30, %v264_v28 }
  0x7d   : > { %v261_v34 = vadd.f32 %v260_v32, %v259_v29  ;;  %v267_v35 = vrot.slane %v266_v33, 1 }
  0x7f   : > { %v268_v38 = vadd.f32 %v267_v35, %v266_v33  ;;  %539 = vrcp.f32 %v261_v34 }
  0x81   : > { %541 = vrcp.f32 %v268_v38 }
  0x89   : > { %v540_v42 = vpop.eup %539 }
  0x8b   : > { %v542_v46 = vpop.eup %541 }
  0x8c   : > { %v275_v47 = vcombine.low %v540_v42, %v542_v46 }
  0x8e   : > { %v277_v49 = vmul.f32 %v538_v19, %v275_v47 }
  0x90   : > { %v322_v51 = vcombine.high %v277_v49, %v277_v49  ;;  %v324_v52 = vsel %vm230_vm0, %v277_v49, 0.0  ;;  %v298_v53 = vmul.f32 %v296_v48, %v277_v49 }
  0x92   : > { %v325_v55 = vsel %vm230_vm0, %v322_v51, 0.0  ;;  %v313_v57 = vcombine.high %v298_v53, %v298_v53  ;;  %v315_v58 = vsel %vm230_vm0, %v298_v53, 0.0 }
  0x93   : > { %v326_v59 = vadd.f32 %v325_v55, %v324_v52 }
  0x94   : > { %v316_v60 = vsel %vm230_vm0, %v313_v57, 0.0 }
  0x95   : > { %327 = vadd.xlane.f32.xlu0 %v326_v59  ;;  %v317_v62 = vadd.f32 %v316_v60, %v315_v58 }
  0x97   : > { %318 = vadd.xlane.f32.xlu1 %v317_v62 }
  0x99   : > { %336 = vadd.xlane.f32.xlu0 %v335_v61 }
 0x122   : > { %v328_v63 = vpop.xlane.xlu0 %327 }
 0x124   : > { %v319_v1 = vpop.xlane.xlu1 %318 }
 0x126   : > { %v337_v0 = vpop.xlane.xlu0 %336 }
 0x127   : > { %v338_v2 = vadd.f32 %v337_v0, %v328_v63 }
 0x129   : > { %v339_v3 = vsub.f32 %v338_v2, %v319_v1 }
 0x12b   : > { %v340_v4 = vadd.f32 1e-16, %v339_v3 }
 0x12d   : > { %543 = vrcp.f32 %v340_v4 }
 0x137   : > { %v544_v5 = vpop.eup %543 }
 0x138   : > { %v342_v6 = vmul.f32 %v544_v5, %v319_v1 }
 0x13a   : > { %v344_v7 = vsel %vm343_vm3, %v342_v6, 0.0 }
 0x13b   : > { %345 = vadd.xlane.f32.xlu1 %v344_v7 }
 0x1c8   : > { %v346_v8 = vpop.xlane.xlu1 %345 }
 0x1c9   : > { %v347_v9 = vrot.slane %v346_v8, 4 }
 0x1cb   : > { %v348_v10 = vadd.f32 %v347_v9, %v346_v8 }
 0x1cd   : > { %v349_v11 = vrot.slane %v348_v10, 2 }
 0x1cf   : > { %v350_v12 = vadd.f32 %v349_v11, %v348_v10 }
 0x1d1   : > { %v351_v13 = vrot.slane %v350_v12, 1 }
 0x1d3   : > { %v352_v14 = vadd.f32 %v351_v13, %v350_v12 }
 0x1d5   : > { %473 = vpush %v352_v14 }
 0x206   : > { %s474_s6 = spop %473 }
 0x207   : > { %v354_v15 = vstv %s474_s6 }
 0x208   : > { %356 = vst.msk [vmem:[%s217_s4] sm:$0x1] %vm355_vm4, %v354_v15 }
 0x209 PF: > { %s18_s14 = sadd.s32 1, %s659_s14   ;;  %s870_s9 = smov %s643_s10 }
 0x20a   : > { %p15_p9 = scmp.ge.s32.totalorder %s18_s14, 4   ;;  %s871_s10 = smov %s647_s11 }
 0x20b   : > { %s872_s11 = smov %s728_s21  ;;  %s873_s12 = smov %s655_s13 }
 0x20c   : > { %s874_s13 = smov %s876_s16  ;;  %17 = sbr.rel (!%p15_p9) target bundleno = 6 (0x6), region = 89 }
 0x213   :  { %374 = vsyncpa [#allocation6], 1 }
 0x214   :  { %376 = vsyncpa [#allocation6 + $0x1], 1 }
 0x215   :  { %377 = vsyncpa [#allocation8], 1 }
 0x216   :  { %379 = vsyncpa [#allocation8 + $0x1], 1 }

</bundles_post_ra>
